<compile_context>
chip_gen: v7x
topology: tpu7x:2x2x1
jax: 0.10.0
libtpu: 0.0.40
codegen_flags: <defaults>
</compile_context>

<pallas_src>
import functools

import jax
import jax.numpy as jnp
import numpy as np
from jax.experimental import pallas as pl
from jax.experimental.pallas import tpu as pltpu


def _decoder_kernel(mix_ref, mask_ref, w_ref, ola_ref, *,
                    hop, compute_dtype, precision):
    # mix_ref : (1, N, TK)       f32 mixture tile for (m, k-tile), deduped across C
    # mask_ref: (1, 1, N, TK)    f32 mask tile for (m, c, k-tile)
    # w_ref   : (L, N)           basis_signals weight (nn.Linear layout), resident
    # ola_ref : (1, 1, hop, TK)  within-tile overlap-add result (frames on lanes)
    src = mix_ref[0] * mask_ref[0, 0]                   # f32 multiply (DMA-bound anyway)
    src = src.astype(compute_dtype)                     # single cast of the product
    frames_t = jnp.dot(w_ref[...], src,
                       preferred_element_type=jnp.float32,
                       precision=precision)             # [L, TK], f32 accumulate
    # Note: the sublane slices below are copy-free when hop % 8 == 0 (f32 tile).
    first = frames_t[:hop, :]                           # -> output column j
    second = frames_t[hop:, :]                          # -> output column j + 1
    # Shift second halves one frame to the right (XLU lane rotate) and drop the
    # wrapped-around column 0 (it belongs to the previous K-tile / to nothing).
    shifted = pltpu.roll(second, shift=1, axis=1)
    lane = jax.lax.broadcasted_iota(jnp.int32, shifted.shape, 1)
    ola = first + jnp.where(lane == 0, 0.0, shifted)
    ola_ref[0, 0] = ola.astype(ola_ref.dtype)


def _tile_vmem_bytes(N, L, hop, tk, in_bytes, w_bytes, out_bytes):
    """Estimated VMEM footprint of one pipelined grid step at frame tile `tk`."""
    mix = 2 * N * tk * in_bytes          # double-buffered mixture tile
    mask = 2 * N * tk * in_bytes         # double-buffered mask tile
    wgt = 2 * L * N * w_bytes            # weight (constant index map; count 2x to be safe)
    outs = 2 * hop * tk * out_bytes      # double-buffered output slab
    acc = L * tk * 4                     # f32 matmul result
    misc = 3 * hop * tk * 4              # roll / mask / add temporaries
    return mix + mask + wgt + outs + acc + misc


def _plan_tiles(N, L, hop, K, in_bytes, w_bytes, out_bytes, frame_tile):
    """Pick the largest lane-aligned frame tile that fits the per-chip VMEM budget."""
    try:
        cap = int(getattr(pltpu.get_tpu_info(), "vmem_capacity_bytes", 128 << 20))
    except Exception:  # CPU / interpret fallback
        cap = 128 << 20
    # ~24 MiB on v5e/v6e (128 MiB VMEM), ~16 MiB on v7x (64 MiB VMEM).
    budget = min(24 << 20, max(8 << 20, cap // 4))

    if frame_tile is not None:
        tk = frame_tile
    elif K % 128 != 0:
        # TODO(synk): ragged K has no lane-aligned tiling; process full K per step.
        tk = K
    else:
        tk = 128
        cand = 256
        while cand <= K:
            if (K % cand == 0 and
                    _tile_vmem_bytes(N, L, hop, cand, in_bytes, w_bytes,
                                     out_bytes) <= budget):
                tk = cand
            cand += 128

    usage = _tile_vmem_bytes(N, L, hop, tk, in_bytes, w_bytes, out_bytes)
    vmem_limit = int(min(max(cap // 2, usage + (4 << 20)), cap - (8 << 20)))
    return tk, vmem_limit


def decoder_forward(mixture_w, est_mask, weight, *,
                    compute_dtype=jnp.bfloat16, frame_tile=None, precision=None):
    """Pallas Decoder forward.

    mixture_w: [M, N, K] float32
    est_mask:  [M, C, N, K] float32
    weight:    [L, N] float32  (nn.Linear(N, L, bias=False).weight layout)
    returns:   [M, C, T] float32, T = (K + 1) * (L // 2)
    """
    M, N, K = mixture_w.shape
    C = est_mask.shape[1]
    L = weight.shape[0]
    assert L % 2 == 0, "overlap_and_add with hop = L // 2 requires even L"
    hop = L // 2

    # Output slab dtype follows the compute dtype (bf16 slab halves output HBM
    # traffic; accuracy is already bounded by the bf16 matmul). The seam fixup
    # and final result are float32, matching the module's semantics.
    slab_dtype = jnp.float32 if np.dtype(compute_dtype) == np.float32 else compute_dtype

    in_bytes = mixture_w.dtype.itemsize          # inputs are NOT pre-cast (stay f32)
    w_bytes = np.dtype(compute_dtype).itemsize
    out_bytes = np.dtype(slab_dtype).itemsize

    tk, vmem_limit = _plan_tiles(N, L, hop, K, in_bytes, w_bytes, out_bytes, frame_tile)
    if K % tk != 0 or (tk != K and tk % 128 != 0):
        tk = K
    kt = K // tk

    w = weight.astype(compute_dtype)             # tiny [L, N]; cast cost negligible

    kernel = functools.partial(_decoder_kernel, hop=hop,
                               compute_dtype=compute_dtype, precision=precision)

    flops = 2 * M * C * K * N * L + M * C * N * K + M * C * hop * K
    bytes_accessed = int(mixture_w.size * mixture_w.dtype.itemsize
                         + est_mask.size * est_mask.dtype.itemsize
                         + w.size * w_bytes
                         + M * C * hop * K * out_bytes)

    ola = pl.pallas_call(
        kernel,
        out_shape=jax.ShapeDtypeStruct((M, C, hop, K), slab_dtype),
        grid=(M, kt, C),  # C innermost: mixture block (m, 0, k) is deduped across C
        in_specs=[
            pl.BlockSpec((1, N, tk), lambda m, k, c: (m, 0, k)),        # mixture (f32)
            pl.BlockSpec((1, 1, N, tk), lambda m, k, c: (m, c, 0, k)),  # est_mask (f32)
            pl.BlockSpec((L, N), lambda m, k, c: (0, 0)),               # weight (resident)
        ],
        out_specs=pl.BlockSpec((1, 1, hop, tk), lambda m, k, c: (m, c, 0, k)),
        compiler_params=pltpu.CompilerParams(
            # C stays "arbitrary" so a megacore (v7x) split lands on M / K-tiles
            # and never breaks the mixture-tile dedup across C.
            dimension_semantics=("parallel", "parallel", "arbitrary"),
            vmem_limit_bytes=vmem_limit),
        cost_estimate=pl.CostEstimate(flops=flops, transcendentals=0,
                                      bytes_accessed=bytes_accessed),
    )(mixture_w, est_mask, w)

    # --- seam fixup + time layout (output-sized data only, ~hop/N of traffic) ---
    # The in-kernel shift/add cannot see across K-tile boundaries, and output
    # column K (tail of the last frame) has no slot in the [hop, K] slab.
    # Recompute those kt "second half" columns from the boundary frames of
    # mix/mask (kt columns only — negligible) and patch them in.
    b = np.arange(1, kt + 1) * tk - 1                       # last frame of every tile
    seam_src = (mixture_w[:, None, :, b] * est_mask[:, :, :, b]).astype(jnp.float32)
    seam = jnp.einsum("hn,mcnk->mchk",
                      weight[hop:, :].astype(jnp.float32), seam_src)  # [M, C, hop, kt]

    out_cols = jnp.concatenate([ola.astype(jnp.float32), seam[..., -1:]],
                               axis=-1)                     # [M, C, hop, K + 1]
    if kt > 1:
        out_cols = out_cols.at[..., np.arange(1, kt) * tk].add(seam[..., :-1])
    return jnp.swapaxes(out_cols, -1, -2).reshape(M, C, (K + 1) * hop)


def _reference_decoder(mixture_w, est_mask, weight):
    """Pure-JAX reference reproducing the PyTorch forward (float32)."""
    sw = mixture_w[:, None, :, :] * est_mask          # [M, C, N, K]
    sw = jnp.swapaxes(sw, 2, 3)                       # [M, C, K, N]
    frames = jnp.einsum("mckn,ln->mckl", sw, weight)  # [M, C, K, L]
    M, C, K, L = frames.shape
    hop = L // 2
    A = frames[..., :hop]
    B = frames[..., hop:]
    zeros = jnp.zeros((M, C, 1, hop), frames.dtype)
    A_pad = jnp.concatenate([A, zeros], axis=2)       # [M, C, K+1, hop]
    B_pad = jnp.concatenate([zeros, B], axis=2)       # [M, C, K+1, hop]
    return (A_pad + B_pad).reshape(M, C, (K + 1) * hop)


if __name__ == "__main__":
    # Small deterministic shapes: M=2 batches, C=2 sources, N=64 basis,
    # K=256 frames, L=16 filter length -> T = (256 - 1) * 8 + 16 = 2056.
    M, C, N, K, L = 2, 2, 64, 256, 16

    key = jax.random.PRNGKey(0)
    k_mix, k_mask, k_w = jax.random.split(key, 3)
    mixture_w = jax.random.normal(k_mix, (M, N, K), dtype=jnp.float32)
    est_mask = jax.nn.sigmoid(
        jax.random.normal(k_mask, (M, C, N, K), dtype=jnp.float32))
    # nn.Linear(N, L, bias=False) weight has shape [L, N].
    weight = (jax.random.normal(k_w, (L, N), dtype=jnp.float32)
              / jnp.sqrt(jnp.float32(N)))

    ref = _reference_decoder(mixture_w, est_mask, weight)
    T = (K - 1) * (L // 2) + L

    # float32 path; frame_tile=128 -> 2 K-tiles so the in-kernel OLA + wrapper
    # seam-column fixup path is exercised.
    out_f32 = jax.block_until_ready(
        decoder_forward(mixture_w, est_mask, weight,
                        compute_dtype=jnp.float32, frame_tile=128))
    assert out_f32.shape == (M, C, T)
    assert jnp.allclose(out_f32, ref, atol=2e-4, rtol=2e-4)

    # Default bfloat16 path (memory-bound perf mode): f32 inputs read directly,
    # product cast once in-kernel, f32 MXU accumulation, bf16 output slab,
    # auto-sized frame tile + per-generation VMEM limit.
    out_bf16 = jax.block_until_ready(
        decoder_forward(mixture_w, est_mask, weight))
    assert out_bf16.shape == (M, C, T)
    assert jnp.allclose(out_bf16, ref, atol=4e-2, rtol=4e-2)

    print("KERNEL_OK")
</pallas_src>

<mosaic_0001>
module attributes {stable_mosaic.version = 11 : i64} {
  func.func @_decoder_kernel(%arg0: i32, %arg1: i32, %arg2: i32, %arg3: memref<1x64x128xf32, #tpu.memory_space<vmem>>, %arg4: memref<1x1x64x128xf32, #tpu.memory_space<vmem>>, %arg5: memref<16x64xf32, #tpu.memory_space<vmem>>, %arg6: memref<1x1x8x128xf32, #tpu.memory_space<vmem>>) attributes {dimension_semantics = [#tpu.dimension_semantics<parallel>, #tpu.dimension_semantics<parallel>, #tpu.dimension_semantics<arbitrary>], iteration_bounds = array<i64: 2, 2, 2>, scalar_prefetch = 0 : i64, scratch_operands = 0 : i64, tpu.core_type = #tpu.core_type<tc>, window_params = [{transform_indices = @transform_0, window_bounds = array<i64: 1, 64, 128>}, {transform_indices = @transform_1, window_bounds = array<i64: 1, 1, 64, 128>}, {pipeline_mode = #tpu.pipeline_mode<synchronous>, transform_indices = @transform_2, window_bounds = array<i64: 16, 64>}, {transform_indices = @transform_3, window_bounds = array<i64: 1, 1, 8, 128>}]} {
    %c0 = arith.constant 0 : index
    %c0_0 = arith.constant 0 : index
    %c0_1 = arith.constant 0 : index
    %0 = vector.load %arg3[%c0, %c0_0, %c0_1] : memref<1x64x128xf32, #tpu.memory_space<vmem>>, vector<1x64x128xf32>
    %1 = vector.shape_cast %0 : vector<1x64x128xf32> to vector<64x128xf32>
    %c0_2 = arith.constant 0 : index
    %c0_3 = arith.constant 0 : index
    %c0_4 = arith.constant 0 : index
    %c0_5 = arith.constant 0 : index
    %2 = vector.load %arg4[%c0_2, %c0_3, %c0_4, %c0_5] : memref<1x1x64x128xf32, #tpu.memory_space<vmem>>, vector<1x1x64x128xf32>
    %3 = vector.shape_cast %2 : vector<1x1x64x128xf32> to vector<64x128xf32>
    %4 = arith.mulf %1, %3 : vector<64x128xf32>
    %c0_6 = arith.constant 0 : index
    %c0_7 = arith.constant 0 : index
    %5 = vector.load %arg5[%c0_6, %c0_7] : memref<16x64xf32, #tpu.memory_space<vmem>>, vector<16x64xf32>
    %cst = arith.constant dense<0.000000e+00> : vector<16x128xf32>
    %6 = tpu.matmul %5, %4, %cst {dimension_numbers = #tpu.dot_dimension_numbers<[1], [0], [0], [1], [0, 0, 1, 1], [], []>} : vector<16x64xf32>, vector<64x128xf32>, vector<16x128xf32> -> vector<16x128xf32>
    %7 = vector.extract_strided_slice %6 {offsets = [0, 0], sizes = [8, 128], strides = [1, 1]} : vector<16x128xf32> to vector<8x128xf32>
    %8 = vector.extract_strided_slice %6 {offsets = [8, 0], sizes = [8, 128], strides = [1, 1]} : vector<16x128xf32> to vector<8x128xf32>
    %c1_i32 = arith.constant 1 : i32
    %9 = tpu.dynamic_rotate %8 by %c1_i32 dim 1 : vector<8x128xf32>, i32 -> vector<8x128xf32>
    %10 = tpu.iota {dimensions = array<i32: 1>} : vector<8x128xi32>
    %c0_i32 = arith.constant 0 : i32
    %11 = vector.broadcast %c0_i32 : i32 to vector<8x128xi32>
    %12 = arith.cmpi eq, %10, %11 : vector<8x128xi32>
    %cst_8 = arith.constant 0.000000e+00 : f32
    %13 = vector.broadcast %cst_8 : f32 to vector<8x128xf32>
    %14 = arith.select %12, %13, %9 : vector<8x128xi1>, vector<8x128xf32>
    %15 = arith.addf %7, %14 : vector<8x128xf32>
    %c0_9 = arith.constant 0 : index
    %c0_10 = arith.constant 0 : index
    %c0_11 = arith.constant 0 : index
    %c0_12 = arith.constant 0 : index
    %16 = vector.load %arg6[%c0_9, %c0_10, %c0_11, %c0_12] : memref<1x1x8x128xf32, #tpu.memory_space<vmem>>, vector<1x1x8x128xf32>
    %17 = vector.shape_cast %16 : vector<1x1x8x128xf32> to vector<8x128xf32>
    %18 = vector.shape_cast %15 : vector<8x128xf32> to vector<1x1x8x128xf32>
    tpu.vector_store %arg6[%c0_9, %c0_10, %c0_11, %c0_12], %18 {strides = array<i32>} : memref<1x1x8x128xf32, #tpu.memory_space<vmem>>, vector<1x1x8x128xf32>,
    return
  }
  func.func @transform_0(%arg0: i32, %arg1: i32, %arg2: i32) -> (i32, i32, i32) {
    %c0_i32 = arith.constant 0 : i32
    %c0_i32_0 = arith.constant 0 : i32
    return %arg0, %c0_i32, %arg1 : i32, i32, i32
  }
  func.func @transform_1(%arg0: i32, %arg1: i32, %arg2: i32) -> (i32, i32, i32, i32) {
    %c0_i32 = arith.constant 0 : i32
    %c0_i32_0 = arith.constant 0 : i32
    return %arg0, %arg2, %c0_i32, %arg1 : i32, i32, i32, i32
  }
  func.func @transform_2(%arg0: i32, %arg1: i32, %arg2: i32) -> (i32, i32) {
    %c0_i32 = arith.constant 0 : i32
    %c0_i32_0 = arith.constant 0 : i32
    %c0_i32_1 = arith.constant 0 : i32
    return %c0_i32, %c0_i32_0 : i32, i32
  }
  func.func @transform_3(%arg0: i32, %arg1: i32, %arg2: i32) -> (i32, i32, i32, i32) {
    %c0_i32 = arith.constant 0 : i32
    %c0_i32_0 = arith.constant 0 : i32
    return %arg0, %arg2, %c0_i32, %arg1 : i32, i32, i32, i32
  }
}

</mosaic_0001>

<bundles_post_ra>
// kernel: tpu_custom_call.1
= control target key start
LH: loop header
LB: loop body
LE: loop exit
PB: predicated region body
PF: predicated region fallthrough
CT: control target
= control target key end

     0   :  { %s1400_s0 = inlined_call_operand.hbm [shape: f32[2,64,256], index: 0, kind: input, shape index: {}]   ;;  %s1401_s1 = inlined_call_operand.hbm [shape: f32[2,2,64,256], index: 1, kind: input, shape index: {}]   ;;  %s1402_s2 = inlined_call_operand.hbm [shape: f32[16,64], index: 2, kind: input, shape index: {}]   ;;  %s1403_s3 = inlined_call_operand.hbm [shape: f32[2,2,8,256], index: 3, kind: output, shape index: {}]  }
   0x1   :  { %1423 = sst [smem:[#allocation21_spill]] %s1400_s0 }
   0x2   :  { %1424 = sst [smem:[#allocation22_spill]] %s1401_s1 }
   0x3   :  { %1425 = sst [smem:[#allocation23_spill]] %s1402_s2 }
   0x4   :  { %1426 = sst [smem:[#allocation24_spill]] %s1403_s3 }
   0x5   :  { %8 = vsyncpa [#allocation3], 0 }
   0x6   :  { %10 = vsyncpa [#allocation3 + $0x1], 0 }
   0x7   :  { %11 = vsyncpa [#allocation6], 0 }
   0x8   :  { %13 = vsyncpa [#allocation6 + $0x1], 0 }
   0x9   :  { %14 = vsyncpa [#allocation4], 0 }
   0xa   :  { %16 = vsyncpa [#allocation4 + $0x1], 0  ;;  %s1011_s12 = smov 0   ;;  %s1013_s13 = smov 0  }
   0xb   :  { %s1015_s14 = smov 0   ;;  %s1017_s15 = smov 0  }
   0xc   :  { %s1019_s16 = smov 0   ;;  %s1021_s17 = smov 0  }
   0xd   :  { %s1023_s18 = smov 0   ;;  %s1025_s19 = smov 0  }
   0xe   :  { %s1027_s20 = smov 0   ;;  %s1029_s21 = smov 0  }
   0xf   :  { %s1031_s22 = smov 0   ;;  %s1033_s23 = smov 0  }
  0x10   :  { %s1035_s24 = smov 0  }
  0x11 LB: > { %1427 = sst [smem:[#allocation13_spill]] %s933_s12  ;;  %s1075_s25 = sadd.s32 4294967295, %s981_s24   ;;  %s981_s24 = sphi %s1035_s24, %s22_s24   ;;  %s977_s23 = sphi %s1033_s23, %s1484_s23   ;;  %s973_s22 = sphi %s1031_s22, %s1483_s22   ;;  %s969_s21 = sphi %s1029_s21, %s1482_s21   ;;  %s965_s20 = sphi %s1027_s20, %s1481_s20   ;;  %s961_s19 = sphi %s1025_s19, %s1480_s19   ;;  %s957_s18 = sphi %s1023_s18, %s1479_s18   ;;  %s953_s17 = sphi %s1021_s17, %s1478_s17   ;;  %s949_s16 = sphi %s1019_s16, %s1477_s16   ;;  %s945_s15 = sphi %s1017_s15, %s1476_s15   ;;  %s941_s14 = sphi %s1015_s14, %s1475_s14   ;;  %s937_s13 = sphi %s1013_s13, %s1474_s13   ;;  %s933_s12 = sphi %s1011_s12, %s1473_s12  }
  0x12   : > { %1428 = sst [smem:[#allocation14_spill]] %s957_s18  ;;  %p1404_p0 = scmp.eq.s32.totalorder %s981_s24, 0 }
  0x13   : > { %1429 = sst [smem:[#allocation15_spill]] %s961_s19  ;;  %p63_p1 = scmp.ne.s32.totalorder %s949_s16, %s945_s15 }
  0x14   : > { %1430 = sst [smem:[#allocation16_spill]] %s965_s20  ;;  %s540_s26 = sadd.s32 4294967294, %s981_s24  }
  0x15   : > { %p1407_p2 = scmp.eq.s32.totalorder %s1075_s25, 0  ;;  %p87_p3 = scmp.ne.s32.totalorder %s941_s14, %s937_s13 }
  0x16   : > { %p93_p4 = scmp.ne.s32.totalorder %s937_s13, %s933_s12  ;;  %p142_p6 = scmp.eq.s32.totalorder %s1075_s25, 7 }
  0x17   : > { %p1087_p5 = por %p1407_p2, %p63_p1  ;;  %p1094_p7 = por %p87_p3, %p1404_p0 }
  0x18   : > { %p1100_p8 = por %p93_p4, %p1407_p2  ;;  %p1104_p9 = por %p142_p6, %p87_p3 }
  0x19   : > { %s1431_s27 = scalar_select %p1087_p5, 1, 0 }
  0x1a   : > { %s1433_s29 = scalar_select %p1100_p8, 1, 0 }
  0x1b   : > { %s1435_s30 = scalar_select %p1104_p9, 1, 0 }
  0x1c   : > { %1434 = sst [smem:[#allocation17_spill]] %s1433_s29  ;;  %p148_p10 = scmp.eq.s32.totalorder %s540_s26, 7 }
  0x1d   : > { %1436 = sst [smem:[#allocation18_spill]] %s1435_s30  ;;  %p541_p11 = scmp.ge.s32.totalorder %s981_s24, 1 }
  0x1e   : > { %p155_p12 = scmp.lt.s32.totalorder %s981_s24, 9  ;;  %p1110_p13 = por %p148_p10, %p93_p4 }
  0x1f   : > { %s983_s6 = smov [#allocation7]   ;;  %p1408_p4 = scmp.lt.s32.totalorder %s981_s24, 8 }
  0x20   : > { %s1437_s4 = scalar_select %p1110_p13, 1, 0 }
  0x21   : > { %p1114_p1 = pnand %p541_p11, %p155_p12  ;;  %s167_s7 = sshll.u32 %s983_s6, 4  ;;  %s168_s7 = int_to_ptr.vmem [resolvable:$true] %s167_s7 }
  0x22   : > { %1438 = sst [smem:[#allocation19_spill]] %s1437_s4  ;;  %p1131_p6 = pnand %p1408_p4, %p1094_p7 }
  0x23   : > { %s1439_s5 = scalar_select %p1114_p1, 1, 0 }
  0x24   : > { %p619_p0 = pneg %p1114_p1  ;;  %s1442_s2 = sld [smem:[#allocation23_spill]] }
  0x25   : > { %s1441_s9 = scalar_select %p1131_p6, 1, 0 }
  0x26   : > { %p1122_p3 = pnand %p619_p0, %p1407_p2 }
  0x28   : > { %p749_p0 = pneg %p1122_p3 }
  0x2a   : > { %s747_s15 = scalar_lea.hbm %s1442_s2, 256 }
  0x2b   : > { %p748_p10 = scmp.ne.s32.totalorder %s1442_s2, %s747_s15  ;;  %p754_p2 = scmp.lt.u32.totalorder %s747_s15, %s1442_s2 }
  0x2d   : > { %p750_p11 = pnand %p749_p0, %p748_p10 }
  0x2f   : > { %p751_p12 = pneg %p750_p11 }
  0x31   : > { %p756_p7 = pnand %p754_p2, %p751_p12 }
  0x33   : > { %759 = shalt.err (!%p756_p7)
}
  0x34   : > { %s760_s28 = scalar_lea.vmem %s168_s7, 256  ;;  %p768_p8 = scmp.lt.s32.totalorder %s168_s7, %s168_s7 }
  0x35   : > { %p761_p4 = scmp.ne.s32.totalorder %s168_s7, %s760_s28  ;;  %p769_p5 = scmp.lt.s32.totalorder %s760_s28, %s760_s28 }
  0x37   : > { %p763_p13 = pnand %p761_p4, %p749_p0  ;;  %p770_p1 = por %p769_p5, %p768_p8 }
  0x39   : > { %p764_p9 = pneg %p763_p13 }
  0x3b   : > { %p771_p6 = pnand %p770_p1, %p764_p9 }
  0x3d   : > { %774 = shalt.err (!%p771_p6)
}
  0x3e   : > { %s1420_s10 = smov 128   ;;  %s1421_s12 = smov 8  }
  0x3f   : > { %622 = dma.hbm_to_vmem [thread:$0]  (!%p1122_p3), %s1442_s2, 256, %s168_s7, [#allocation6], %s1420_s10, %s1420_s10, %s1421_s12  }
  0x40   : > { %s37_s26 = sadd.s32 1, %s973_s22  ;;  %s41_s6 = sadd.s32 1, %s977_s23 }
  0x41   : > { %p57_p2 = scmp.ne.s32.totalorder %s953_s17, %s949_s16  ;;  %s181_s28 = sand.u32 1, %s953_s17  }
  0x42   : > { %s544_s3 = sshll.u32 %s181_s28, 6  ;;  %p1443_p5 = scmp.eq.s32.totalorder %s981_s24, 0 }
  0x43   : > { %s545_s30 = sshll.u32 %s977_s23, 4  ;;  %s185_s20 = scalar_lea.vmem [#allocation2], %s544_s3 }
  0x44   : > { %p59_p8 = por %p1443_p5, %p57_p2  ;;  %s193_s19 = sshll.u32 %s185_s20, 4  ;;  %s1164_s19 = int_to_ptr.vmem [resolvable:$true] %s193_s19 }
  0x45   : > { %s190_s18 = sadd.s32 %s973_s22, %s545_s30  ;;  %p1444_p9 = scmp.lt.s32.totalorder %s981_s24, 8 }
  0x46   : > { %s546_s8 = sshll.u32 %s190_s18, 7  ;;  %s1446_s0 = sld [smem:[#allocation21_spill]] }
  0x47   : > { %p1168_p13 = pnand %p1444_p9, %p59_p8  ;;  %s1177_s3 = scalar_lea.sflag [#allocation3], %s181_s28 }
  0x49   : > { %p777_p3 = pneg %p1168_p13 }
  0x4c   : > { %s1175_s11 = scalar_lea.hbm %s1446_s0, %s546_s8  ;;  %s780_s7 = scalar_lea.hbm %s1446_s0, 4096 }
  0x4d   : > { %s775_s20 = scalar_lea.hbm %s1175_s11, 1024  ;;  %p781_p10 = scmp.lt.u32.totalorder %s1175_s11, %s1446_s0 }
  0x4e   : > { %p776_p1 = scmp.ne.s32.totalorder %s1175_s11, %s775_s20  ;;  %p782_p0 = scmp.lt.u32.totalorder %s780_s7, %s775_s20 }
  0x4f   : > { %p784_p12 = scmp.lt.u32.totalorder %s775_s20, %s1175_s11 }
  0x50   : > { %p778_p4 = pnand %p777_p3, %p776_p1  ;;  %p783_p11 = por %p782_p0, %p781_p10 }
  0x52   : > { %p779_p6 = pneg %p778_p4  ;;  %p785_p7 = por %p784_p12, %p783_p11 }
  0x54   : > { %p786_p2 = pnand %p785_p7, %p779_p6 }
  0x56   : > { %789 = shalt.err (!%p786_p2)
}
  0x57   : > { %s790_s28 = scalar_lea.vmem %s1164_s19, 1024  ;;  %s986_s18 = smov [#allocation2]  }
  0x58   : > { %p791_p5 = scmp.ne.s32.totalorder %s1164_s19, %s790_s28  ;;  %s795_s30 = sshll.u32 %s986_s18, 4  ;;  %s796_s30 = int_to_ptr.vmem [resolvable:$false] %s795_s30 }
  0x59   : > { %s797_s8 = scalar_lea.vmem %s796_s30, 2048  ;;  %p798_p1 = scmp.lt.s32.totalorder %s1164_s19, %s796_s30 }
  0x5a   : > { %p793_p8 = pnand %p791_p5, %p777_p3  ;;  %p799_p4 = scmp.lt.s32.totalorder %s797_s8, %s790_s28 }
  0x5c   : > { %p794_p9 = pneg %p793_p8  ;;  %p800_p10 = por %p799_p4, %p798_p1 }
  0x5e   : > { %p801_p0 = pnand %p800_p10, %p794_p9 }
  0x60   : > { %804 = shalt.err (!%p801_p0)
}
  0x61   : > { %s1419_s20 = smov 256   ;;  %s203_s7 = sand.u32 1, %s981_s24  }
  0x62   : > { %626 = dma.hbm_to_vmem [thread:$0]  (!%p1168_p13), %s1175_s11, 1024, %s1164_s19, %s1177_s3, %s1419_s20, %s1420_s10, %s1421_s12  }
  0x63   : > { %s34_s29 = sadd.s32 1, %s969_s21  ;;  %s205_s4 = sand.u32 1, %s941_s14  }
  0x64   : > { %p35_p3 = scmp.ge.s32.totalorder %s34_s29, 2  ;;  %s547_s28 = sshll.u32 %s205_s4, 6 }
  0x65   : > { %s548_s18 = sshll.u32 %s969_s21, 4  ;;  %s549_s15 = sshll.u32 %s977_s23, 5 }
  0x66   : > { %s1486_s29 = smov (%p35_p3, %s34_s29), 0  ;;  %s1488_s26 = smov (!%p35_p3, %s37_s26), %s973_s22 }
  0x67   : > { %p39_p6 = scmp.ge.s32.totalorder %s1488_s26, 2  ;;  %s212_s8 = sadd.s32 %s973_s22, %s548_s18 }
  0x68   : > { %s207_s19 = scalar_lea.vmem [#allocation5], %s547_s28  ;;  %s214_s4 = sadd.s32 %s549_s15, %s212_s8 }
  0x69   : > { %s217_s11 = sshll.u32 %s207_s19, 4  ;;  %s1490_s26 = smov (%p39_p6, %s1488_s26), 0  ;;  %s1235_s11 = int_to_ptr.vmem [resolvable:$true] %s217_s11 }
  0x6a   : > { %s1492_s6 = smov (!%p39_p6, %s41_s6), %s977_s23  ;;  %s1228_s3 = ssub.s32 %s973_s22, %s1490_s26 }
  0x6b   : > { %p43_p13 = scmp.ge.s32.totalorder %s1492_s6, 2  ;;  %s550_s20 = sshll.u32 %s214_s4, 7 }
  0x6c   : > { %s1447_s1 = sld [smem:[#allocation22_spill]]  ;;  %s1239_s28 = scalar_lea.sflag [#allocation6], %s203_s7 }
  0x6d   : > { %s1494_s6 = smov (%p43_p13, %s1492_s6), 0  ;;  %p1449_p12 = scmp.ne.s32.totalorder %s1441_s9, 0 }
  0x6e   : > { %1448 = sst [smem:[#allocation20_spill]] %s1494_s6 }
  0x6f   : > { %p807_p7 = pneg %p1449_p12 }
  0x72   : > { %s1233_s30 = scalar_lea.hbm %s1447_s1, %s550_s20  ;;  %s810_s15 = scalar_lea.hbm %s1447_s1, 8192 }
  0x73   : > { %s805_s18 = scalar_lea.hbm %s1233_s30, 1024  ;;  %p811_p8 = scmp.lt.u32.totalorder %s1233_s30, %s1447_s1 }
  0x74   : > { %p806_p11 = scmp.ne.s32.totalorder %s1233_s30, %s805_s18  ;;  %p812_p9 = scmp.lt.u32.totalorder %s810_s15, %s805_s18 }
  0x75   : > { %p814_p4 = scmp.lt.u32.totalorder %s805_s18, %s1233_s30 }
  0x76   : > { %p808_p2 = pnand %p807_p7, %p806_p11  ;;  %p813_p1 = por %p812_p9, %p811_p8 }
  0x78   : > { %p809_p5 = pneg %p808_p2  ;;  %p815_p10 = por %p814_p4, %p813_p1 }
  0x7a   : > { %p816_p0 = pnand %p815_p10, %p809_p5 }
  0x7c   : > { %819 = shalt.err (!%p816_p0)
}
  0x7d   : > { %s820_s7 = scalar_lea.vmem %s1235_s11, 1024  ;;  %s988_s19 = smov [#allocation5]  }
  0x7e   : > { %p821_p3 = scmp.ne.s32.totalorder %s1235_s11, %s820_s7  ;;  %s825_s4 = sshll.u32 %s988_s19, 4  ;;  %s826_s4 = int_to_ptr.vmem [resolvable:$false] %s825_s4 }
  0x7f   : > { %s827_s10 = scalar_lea.vmem %s826_s4, 2048  ;;  %p828_p11 = scmp.lt.s32.totalorder %s1235_s11, %s826_s4 }
  0x80   : > { %p823_p6 = pnand %p821_p3, %p807_p7  ;;  %p829_p2 = scmp.lt.s32.totalorder %s827_s10, %s820_s7 }
  0x82   : > { %p824_p13 = pneg %p823_p6  ;;  %p830_p8 = por %p829_p2, %p828_p11 }
  0x84   : > { %p831_p9 = pnand %p830_p8, %p824_p13 }
  0x86   : > { %834 = shalt.err (!%p831_p9)
}
  0x87   : > { %s1450_s18 = smov 8   ;;  %s1451_s12 = smov 128  }
  0x88   : > { %s1452_s15 = smov 256   ;;  %s50_s20 = sadd.s32 1, %s953_s17 }
  0x89   : > { %629 = dma.hbm_to_vmem [thread:$0]  (!%p1449_p12), %s1233_s30, 1024, %s1235_s11, %s1239_s28, %s1452_s15, %s1451_s12, %s1450_s18  }
  0x8a   : > { %s45_s8 = ssub.s32 %s977_s23, %s1494_s6  ;;  %s1453_s7 = ssub.s32 %s969_s21, %s1486_s29 }
  0x8b   : > { %s47_s9 = sor.u32 %s1228_s3, %s45_s8  ;;  %s75_s19 = sor.u32 %s1453_s7, %s45_s8 }
  0x8c   : > { %p48_p7 = scmp.eq.s32.totalorder %s47_s9, 0  ;;  %s77_s4 = sor.u32 %s75_s19, %s1228_s3 }
  0x8d   : > { %p78_p5 = scmp.eq.s32.totalorder %s77_s4, 0  ;;  %s1454_s0 = sadd.s32 1, %s941_s14 }
  0x8e   : > { %s1279_s10 = scalar_select %p48_p7, %s953_s17, %s50_s20  }
  0x8f   : > { %s1284_s1 = scalar_select %p78_p5, %s941_s14, %s1454_s0  }
  0x90   : > { %p1455_p1 = scmp.ne.s32.totalorder %s1439_s5, 0 }
  0x91   : > { %s231_s2 = sand.u32 (!%p1455_p1), 1, %s949_s16   ;;  %p1456_p12 = scmp.ne.s32.totalorder (!%p1455_p1), %s1431_s27, 0 }
  0x92   : > { %229 = sbr.rel (%p1455_p1) target bundleno = 532 (0x214), region = 32  ;;  %s552_s30 = sshll.u32 (!%p1455_p1), %s231_s2, 6 }
  0x93   : > { %s232_s11 = scalar_lea.sflag (!%p1455_p1), [#allocation3], %s231_s2  ;;  %s1289_s28 = scalar_lea.vmem (!%p1455_p1), [#allocation2], %s552_s30 }
  0x99   : > { %916 = dma.done.wait (%p1456_p12), %s232_s11, 1024  }
  0x9a   : > { %918 = vsyncadd (%p1456_p12), %s232_s11, 4294966272  ;;  %s1457_s3 = sld [smem:[#allocation17_spill]]  ;;  %s240_s0 = sand.u32 1, %s1075_s25  }
  0x9b   : > { %s1297_s18 = sand.u32 1, %s937_s13   ;;  %s241_s12 = scalar_lea.sflag [#allocation6], %s240_s0 }
  0x9c   : > { %s553_s5 = sshll.u32 %s1297_s18, 6 }
  0x9d   : > { %s244_s15 = scalar_lea.vmem [#allocation5], %s553_s5 }
  0xa0   : > { %p1458_p4 = scmp.ne.s32.totalorder %s1457_s3, 0 }
  0xa2   : > { %920 = dma.done.wait (%p1458_p4), %s241_s12, 1024  }
  0xa3   : > { %922 = vsyncadd (%p1458_p4), %s241_s12, 4294966272  ;;  %p1459_p10 = scmp.eq.s32.totalorder %s1075_s25, 0 }
  0xa5   : > { %924 = dma.done.wait (%p1459_p10), [#allocation6], 256   ;;  %p1460_p0 = pmov %p1459_p10 }
  0xa6   : > { %v276_v0 = vld [vmem:[%s1289_s28] sm:$0xff]  ;;  %v277_v1 = vld [vmem:[%s1289_s28 + $0x8] sm:$0xff]  ;;  %v278_v5 = vld [vmem:[%s1289_s28 + $0x10] sm:$0xff]  ;;  %vm302_vm0 = vcmask 523264   ;;  %s1461_s2 = sld [smem:[#allocation14_spill]]  ;;  %s1462_s25 = sld [smem:[#allocation15_spill]]  ;;  %v386_v32 = vlaneseq }
  0xa7   : > { %926 = vsyncadd (%p1460_p0), [#allocation6], 4294967040  ;;  %v284_v2 = vld [vmem:[%s244_s15] sm:$0xff]  ;;  %v285_v3 = vld [vmem:[%s244_s15 + $0x8] sm:$0xff]  ;;  %s1463_s27 = sld [smem:[#allocation16_spill]]  ;;  %s989_s20 = smov 1  }
  0xa8   : > { %v292_v4 = vmul.f32 %v284_v2, %v276_v0  ;;  %v279_v6 = vld [vmem:[%s1289_s28 + $0x18] sm:$0xff]  ;;  %v293_v7 = vmul.f32 %v285_v3, %v277_v1  ;;  %v286_v8 = vld [vmem:[%s244_s15 + $0x10] sm:$0xff]  ;;  %v280_v10 = vld [vmem:[%s1289_s28 + $0x20] sm:$0xff]  ;;  %s555_s9 = sshll.u32 %s1297_s18, 3  ;;  %s1464_s4 = sld [smem:[#allocation18_spill]]  ;;  %v387_v33 = vand.u32 127, %v386_v32 }
  0xa9   : > { %v287_v9 = vld [vmem:[%s244_s15 + $0x18] sm:$0xff]  ;;  %v294_v11 = vmul.f32 %v286_v8, %v278_v5  ;;  %v281_v13 = vld [vmem:[%s1289_s28 + $0x28] sm:$0xff]  ;;  %v288_v14 = vld [vmem:[%s244_s15 + $0x20] sm:$0xff]  ;;  %s1465_s12 = sld [smem:[#allocation24_spill]] }
  0xaa   : > { %v295_v12 = vmul.f32 %v287_v9, %v279_v6  ;;  %v289_v15 = vld [vmem:[%s244_s15 + $0x28] sm:$0xff]  ;;  %v593_v16 = vpack.c.bf16 %v293_v7, %v292_v4  ;;  %v296_v17 = vmul.f32 %v288_v14, %v280_v10  ;;  %v282_v19 = vld [vmem:[%s1289_s28 + $0x30] sm:$0xff]  ;;  %v283_v20 = vld [vmem:[%s1289_s28 + $0x38] sm:$0xff]  ;;  %vm388_vm1 = vcmp.eq.s32.totalorder %v387_v33, 0  ;;  %s275_s28 = scalar_lea.vmem [#allocation8], %s555_s9 }
  0xab   : > { %v297_v18 = vmul.f32 %v289_v15, %v281_v13  ;;  %v290_v22 = vld [vmem:[%s244_s15 + $0x30] sm:$0xff]  ;;  %v291_v23 = vld [vmem:[%s244_s15 + $0x38] sm:$0xff]  ;;  %v300_v24 = vld [vmem:[#allocation7] sm:$0xff]  ;;  %s410_s3 = sshll.u32 %s275_s28, 4  ;;  %s1327_s3 = int_to_ptr.vmem [resolvable:$true] %s410_s3 }
  0xac   : > { %v597_v21 = vpack.c.bf16 %v295_v12, %v294_v11  ;;  %594 = vmatprep.subr.bf16.mxu0 %v593_v16  ;;  %590 = vmatprep.mubr.msk.f32.mxu0 %vm302_vm0, %v300_v24  ;;  %v298_v26 = vmul.f32 %v290_v22, %v282_v19  ;;  %v299_v27 = vmul.f32 %v291_v23, %v283_v20  ;;  %v301_v29 = vld [vmem:[#allocation7 + $0x8] sm:$0xff]  ;;  %s559_s8 = sshll.u32 %s1461_s2, 1  ;;  %s393_s2 = scalar_lea.sflag [#allocation4], %s1297_s18 }
  0xad   : > { %596 = vmatpush3.bf16.msra.mxu0 %v593_v16  ;;  %v601_v25 = vpack.c.bf16 %v297_v18, %v296_v17  ;;  %s404_s7 = sadd.s32 %s1462_s25, %s559_s8  ;;  %s560_s19 = sshll.u32 %s1463_s27, 2 }
  0xae   : > { %598 = vmatprep.subr.bf16.mxu0 %v597_v21  ;;  %v605_v28 = vpack.c.bf16 %v299_v27, %v298_v26  ;;  %s406_s30 = sadd.s32 %s560_s19, %s404_s7  ;;  %s835_s25 = scalar_lea.vmem %s1327_s3, 128 }
  0xaf   : > { %s561_s11 = sshll.u32 %s406_s30, 7  ;;  %s1466_s6 = smov %s1465_s12 }
  0xb0   : > { %s1325_s15 = scalar_lea.hbm %s1465_s12, %s561_s11  ;;  %p836_p3 = scmp.ne.s32.totalorder %s1327_s3, %s835_s25 }
  0xb1   : > { %600 = vmatpush3.bf16.msra.mxu0 %v597_v21  ;;  %p1467_p6 = scmp.ne.s32.totalorder %s1464_s4, 0  ;;  %s990_s27 = smov [#allocation8]  }
  0xb2   : > { %602 = vmatprep.subr.bf16.mxu0 %v601_v25 }
  0xb3   : > { %p837_p13 = pnand %p836_p3, %p1467_p6 }
  0xb5   : > { %604 = vmatpush3.bf16.msra.mxu0 %v601_v25  ;;  %p838_p11 = pneg %p837_p13 }
  0xb6   : > { %606 = vmatprep.subr.bf16.mxu0 %v605_v28 }
  0xb9   : > { %608 = vmatpush3.bf16.msra.mxu0 %v605_v28 }
  0xbc   : > { %591 = vmatmul.mubr.msk.f32.vlgmr.msra.gmra.mrb[0].mxu0 %vm302_vm0, %v301_v29 }
 0x18f   : > { %v592_v30 = vpop.f32.mrb[0].mxu0 }
 0x190   : > { %v375_v31 = vpop.f32.mrb[1].mxu0  ;;  %384 = vrot.lane.b32.xlu0 %v592_v30, %s989_s20  ;;  %s839_s20 = sshll.u32 %s990_s27, 4  ;;  %s840_s20 = int_to_ptr.vmem [resolvable:$false] %s839_s20 }
 0x191   : > { %s841_s8 = scalar_lea.vmem %s840_s20, 256  ;;  %p842_p2 = scmp.lt.s32.totalorder %s1327_s3, %s840_s20 }
 0x192   : > { %p843_p8 = scmp.lt.s32.totalorder %s841_s8, %s835_s25 }
 0x194   : > { %p844_p9 = por %p843_p8, %p842_p2 }
 0x196   : > { %p845_p7 = pnand %p844_p9, %p838_p11 }
 0x202   : > { %v385_v34 = vpop.permute.xlu0 %384 }
 0x203   : > { %v389_v35 = vsel %vm388_vm1, 0.0, %v385_v34 }
 0x204   : > { %v390_v36 = vadd.f32 %v389_v35, %v375_v31 }
 0x206   : > { %391 = vst [vmem:[%s275_s28] sm:$0xff] %v390_v36 }
 0x207   : > { %848 = shalt.err (!%p845_p7)
}
 0x208   : > { %s849_s18 = scalar_lea.hbm %s1325_s15, 128  ;;  %s853_s19 = scalar_lea.hbm %s1466_s6, 1024 }
 0x209   : > { %p850_p5 = scmp.ne.s32.totalorder %s1325_s15, %s849_s18  ;;  %p854_p4 = scmp.lt.u32.totalorder %s1325_s15, %s1466_s6 }
 0x20a   : > { %p855_p10 = scmp.lt.u32.totalorder %s853_s19, %s849_s18  ;;  %p857_p3 = scmp.lt.u32.totalorder %s849_s18, %s1325_s15 }
 0x20b   : > { %p851_p1 = pnand %p850_p5, %p1467_p6 }
 0x20c   : > { %p856_p0 = por %p855_p10, %p854_p4 }
 0x20d   : > { %p852_p12 = pneg %p851_p1 }
 0x20e   : > { %p858_p13 = por %p857_p3, %p856_p0 }
 0x210   : > { %p859_p11 = pnand %p858_p13, %p852_p12 }
 0x212   : > { %862 = shalt.err (!%p859_p11)
}
 0x213   : > { %617 = dma.vmem_to_hbm [thread:$0]  (%p1467_p6), %s1327_s3, 128, %s1325_s15, %s393_s2  }
 0x214 PF: > { %s1468_s28 = sld [smem:[#allocation13_spill]]  ;;  %s1469_s0 = sld [smem:[#allocation19_spill]] }
 0x215   : > { %p637_p2 = scmp.ge.s32.totalorder %s981_s24, 2 }
 0x21a   : > { %s422_s5 = sand.u32 1, %s1468_s28   ;;  %p1470_p8 = scmp.ne.s32.totalorder %s1469_s0, 0 }
 0x21b   : > { %s423_s12 = scalar_lea.sflag [#allocation4], %s422_s5 }
 0x21c   : > { %p631_p9 = pnand %p637_p2, %p1470_p8 }
 0x21e   : > { %928 = dma.done.wait (!%p631_p9), %s423_s12, 128  }
 0x21f   : > { %930 = vsyncadd (!%p631_p9), %s423_s12, 4294967168  ;;  %s22_s24 = sadd.s32 1, %s981_s24   ;;  %s1472_s4 = sld [smem:[#allocation20_spill]] }
 0x220   : > { %p1356_p7 = scmp.ge.s32.totalorder %s22_s24, 10   ;;  %s1473_s12 = smov %s937_s13 }
 0x221   : > { %s1474_s13 = smov %s941_s14  ;;  %s1475_s14 = smov %s1284_s1 }
 0x222   : > { %s1476_s15 = smov %s949_s16  ;;  %s1477_s16 = smov %s953_s17 }
 0x223   : > { %s1478_s17 = smov %s1279_s10  ;;  %s1479_s18 = smov %s969_s21 }
 0x224   : > { %s1480_s19 = smov %s973_s22  ;;  %s1481_s20 = smov %s977_s23 }
 0x225   : > { %s1482_s21 = smov %s1486_s29  ;;  %s1483_s22 = smov %s1490_s26 }
 0x226   : > { %s1484_s23 = smov %s1472_s4  ;;  %21 = sbr.rel (!%p1356_p7) target bundleno = 17 (0x11), region = 94 }
 0x22d   :  { %428 = vsyncpa [#allocation3], 1 }
 0x22e   :  { %430 = vsyncpa [#allocation3 + $0x1], 1 }
 0x22f   :  { %431 = vsyncpa [#allocation6], 1 }
 0x230   :  { %433 = vsyncpa [#allocation6 + $0x1], 1 }
 0x231   :  { %434 = vsyncpa [#allocation4], 1 }
 0x232   :  { %436 = vsyncpa [#allocation4 + $0x1], 1 }

</bundles_post_ra>
